<compile_context>
chip_gen: v6e
topology: v6e:2x2x1
jax: 0.10.0
libtpu: 0.0.40
codegen_flags: <defaults>
</compile_context>

<pallas_src>
import jax
import jax.numpy as jnp
from jax.experimental import pallas as pl
from jax.experimental.pallas import tpu as pltpu


def _conv_bn_relu_kernel(x_ref, w_ref, scale_ref, bias_ref, o_ref):
    """One (image, spatial-tile) per grid step.

    x_ref:     (1, K9, ST)   bf16 patch slab (K = KH*KW*Cin in sublanes,
                             spatial tile in lanes)
    w_ref:     (Cout, K9)    bf16 flattened conv weights (grid-resident)
    scale_ref: (Cout, 1)     f32 folded BN scale = gamma / sqrt(var + eps)
    bias_ref:  (Cout, 1)     f32 folded BN bias  = beta - mean * scale
    o_ref:     (1, Cout, ST) output tile, spatial dim lane-dense
    """
    # Single MXU matmul, K = KH*KW*Cin, f32 accumulation.
    acc = jnp.dot(w_ref[...], x_ref[0],
                  preferred_element_type=jnp.float32)        # (Cout, ST)
    # Fused BatchNorm2d (inference affine) + ReLU, elementwise in f32.
    y = acc * scale_ref[...] + bias_ref[...]
    y = jnp.maximum(y, 0.0)
    o_ref[0] = y.astype(o_ref.dtype)


def conv_layer(x, w, gamma, beta, running_mean, running_var, *,
               eps=1e-5, compute_dtype=jnp.bfloat16, spatial_tile=512):
    """ConvLayer forward: Conv2d(k, s=1, same-pad, no bias) -> BN2d(eval) -> ReLU.

    x: (N, Cin, H, W); w: (Cout, Cin, KH, KW); BN params: (Cout,).
    Returns (N, Cout, H, W) in x.dtype.
    """
    N, C_in, H, W = x.shape
    C_out, _, KH, KW = w.shape
    pad = (KH - 1) // 2                       # get_same_padding(kernel_size)
    S = H * W
    K9 = KH * KW * C_in

    # ---- Wrapper-side layout plumbing (done once, not hot-path compute) ----
    # Zero-pad spatially in NCHW, then stack the KH*KW shifted views along the
    # channel axis -> (N, K9, S).  No transposes of the activation tensor.
    xc = x.astype(compute_dtype)
    x_p = jnp.pad(xc, ((0, 0), (0, 0), (pad, pad), (pad, pad)))
    cols = [x_p[:, :, kh:kh + H, kw:kw + W].reshape(N, C_in, S)
            for kh in range(KH) for kw in range(KW)]
    patches = jnp.concatenate(cols, axis=1)                    # (N, K9, S)

    # Weights flattened to (Cout, K9) with matching (kh, kw, cin) ordering.
    w_flat = jnp.transpose(w, (0, 2, 3, 1)).reshape(C_out, K9)
    w_flat = w_flat.astype(compute_dtype)

    # Fold BN (inference) into per-channel scale/bias, broadcast along lanes.
    scale_1d = (gamma / jnp.sqrt(running_var + eps)).astype(jnp.float32)
    bias_1d = (beta - running_mean * scale_1d).astype(jnp.float32)
    scale = scale_1d.reshape(C_out, 1)
    bias = bias_1d.reshape(C_out, 1)

    # ---- Spatial tiling ----
    if S <= spatial_tile:
        ST, S_pad = S, S                       # single block, no padding
    else:
        ST = spatial_tile                      # multiple of 128
        S_pad = -(-S // ST) * ST
    if S_pad != S:
        patches = jnp.pad(patches, ((0, 0), (0, 0), (0, S_pad - S)))

    grid = (N, S_pad // ST)

    out_flat = pl.pallas_call(
        _conv_bn_relu_kernel,
        out_shape=jax.ShapeDtypeStruct((N, C_out, S_pad), x.dtype),
        grid_spec=pltpu.PrefetchScalarGridSpec(
            num_scalar_prefetch=0,
            grid=grid,
            in_specs=[
                pl.BlockSpec((1, K9, ST), lambda n, s: (n, 0, s)),
                pl.BlockSpec((C_out, K9), lambda n, s: (0, 0)),   # resident
                pl.BlockSpec((C_out, 1), lambda n, s: (0, 0)),    # resident
                pl.BlockSpec((C_out, 1), lambda n, s: (0, 0)),    # resident
            ],
            out_specs=pl.BlockSpec((1, C_out, ST), lambda n, s: (n, 0, s)),
        ),
        compiler_params=pltpu.CompilerParams(
            dimension_semantics=("parallel", "parallel"),
            vmem_limit_bytes=32 * 1024 * 1024,   # explicit; safe on v5e/v6e/v7x
        ),
    )(patches, w_flat, scale, bias)

    # Already NCHW-ordered; drop spatial padding (no-op when S_pad == S) and
    # do a metadata-only reshape.
    return out_flat[:, :, :S].reshape(N, C_out, H, W)


def _reference(x, w, gamma, beta, mean, var, eps=1e-5):
    y = jax.lax.conv_general_dilated(
        x, w, window_strides=(1, 1), padding=((1, 1), (1, 1)),
        dimension_numbers=("NCHW", "OIHW", "NCHW"),
        precision=jax.lax.Precision.HIGHEST,
        preferred_element_type=jnp.float32)
    s = gamma / jnp.sqrt(var + eps)
    b = beta - mean * s
    y = y * s[None, :, None, None] + b[None, :, None, None]
    return jnp.maximum(y, 0.0)


if __name__ == "__main__":
    N, C_in, C_out, H, W = 2, 4, 8, 16, 16
    KH = KW = 3

    key = jax.random.PRNGKey(0)
    kx, kw_, kg, kb, km, kv = jax.random.split(key, 6)
    x = jax.random.normal(kx, (N, C_in, H, W), dtype=jnp.float32)
    w = jax.random.normal(kw_, (C_out, C_in, KH, KW), dtype=jnp.float32) * 0.1
    gamma = 1.0 + 0.1 * jax.random.normal(kg, (C_out,), dtype=jnp.float32)
    beta = 0.1 * jax.random.normal(kb, (C_out,), dtype=jnp.float32)
    running_mean = 0.1 * jax.random.normal(km, (C_out,), dtype=jnp.float32)
    running_var = jax.random.uniform(kv, (C_out,), dtype=jnp.float32,
                                     minval=0.5, maxval=1.5)

    out = conv_layer(x, w, gamma, beta, running_mean, running_var)
    out = jax.block_until_ready(out)

    # Reference on the same bf16-quantized operands (kernel uses bf16 on the
    # MXU with f32 accumulation), so only accumulation order differs.
    x_q = x.astype(jnp.bfloat16).astype(jnp.float32)
    w_q = w.astype(jnp.bfloat16).astype(jnp.float32)
    ref = _reference(x_q, w_q, gamma, beta, running_mean, running_var)

    assert out.shape == (N, C_out, H, W)
    assert jnp.allclose(out, ref, atol=2e-2, rtol=2e-2), "mismatch vs reference"

    print("KERNEL_OK")
</pallas_src>

<mosaic_0001>
module attributes {stable_mosaic.version = 11 : i64} {
  func.func @_conv_bn_relu_kernel(%arg0: i32, %arg1: i32, %arg2: memref<1x36x256xbf16, #tpu.memory_space<vmem>>, %arg3: memref<8x36xbf16, #tpu.memory_space<vmem>>, %arg4: memref<8x1xf32, #tpu.memory_space<vmem>>, %arg5: memref<8x1xf32, #tpu.memory_space<vmem>>, %arg6: memref<1x8x256xf32, #tpu.memory_space<vmem>>) attributes {dimension_semantics = [#tpu.dimension_semantics<parallel>, #tpu.dimension_semantics<parallel>], iteration_bounds = array<i64: 2, 1>, scalar_prefetch = 0 : i64, scratch_operands = 0 : i64, tpu.core_type = #tpu.core_type<tc>, window_params = [{transform_indices = @transform_0, window_bounds = array<i64: 1, 36, 256>}, {pipeline_mode = #tpu.pipeline_mode<synchronous>, transform_indices = @transform_1, window_bounds = array<i64: 8, 36>}, {pipeline_mode = #tpu.pipeline_mode<synchronous>, transform_indices = @transform_2, window_bounds = array<i64: 8, 1>}, {pipeline_mode = #tpu.pipeline_mode<synchronous>, transform_indices = @transform_3, window_bounds = array<i64: 8, 1>}, {transform_indices = @transform_4, window_bounds = array<i64: 1, 8, 256>}]} {
    %c0 = arith.constant 0 : index
    %c0_0 = arith.constant 0 : index
    %0 = vector.load %arg3[%c0, %c0_0] : memref<8x36xbf16, #tpu.memory_space<vmem>>, vector<8x36xbf16>
    %c0_1 = arith.constant 0 : index
    %c0_2 = arith.constant 0 : index
    %c0_3 = arith.constant 0 : index
    %1 = vector.load %arg2[%c0_1, %c0_2, %c0_3] : memref<1x36x256xbf16, #tpu.memory_space<vmem>>, vector<1x36x256xbf16>
    %2 = vector.shape_cast %1 : vector<1x36x256xbf16> to vector<36x256xbf16>
    %cst = arith.constant dense<0.000000e+00> : vector<8x256xf32>
    %3 = tpu.matmul %0, %2, %cst {dimension_numbers = #tpu.dot_dimension_numbers<[1], [0], [0], [1], [0, 0, 1, 1], [], []>} : vector<8x36xbf16>, vector<36x256xbf16>, vector<8x256xf32> -> vector<8x256xf32>
    %c0_4 = arith.constant 0 : index
    %c0_5 = arith.constant 0 : index
    %4 = vector.load %arg4[%c0_4, %c0_5] : memref<8x1xf32, #tpu.memory_space<vmem>>, vector<8x1xf32>
    %5 = vector.broadcast %4 : vector<8x1xf32> to vector<8x256xf32>
    %6 = arith.mulf %3, %5 : vector<8x256xf32>
    %c0_6 = arith.constant 0 : index
    %c0_7 = arith.constant 0 : index
    %7 = vector.load %arg5[%c0_6, %c0_7] : memref<8x1xf32, #tpu.memory_space<vmem>>, vector<8x1xf32>
    %8 = vector.broadcast %7 : vector<8x1xf32> to vector<8x256xf32>
    %9 = arith.addf %6, %8 : vector<8x256xf32>
    %cst_8 = arith.constant 0.000000e+00 : f32
    %10 = vector.broadcast %cst_8 : f32 to vector<8x256xf32>
    %11 = arith.maximumf %9, %10 : vector<8x256xf32>
    %c0_9 = arith.constant 0 : index
    %c0_10 = arith.constant 0 : index
    %c0_11 = arith.constant 0 : index
    %12 = vector.load %arg6[%c0_9, %c0_10, %c0_11] : memref<1x8x256xf32, #tpu.memory_space<vmem>>, vector<1x8x256xf32>
    %13 = vector.shape_cast %12 : vector<1x8x256xf32> to vector<8x256xf32>
    %14 = vector.shape_cast %11 : vector<8x256xf32> to vector<1x8x256xf32>
    tpu.vector_store %arg6[%c0_9, %c0_10, %c0_11], %14 {strides = array<i32>} : memref<1x8x256xf32, #tpu.memory_space<vmem>>, vector<1x8x256xf32>,
    return
  }
  func.func @transform_0(%arg0: i32, %arg1: i32) -> (i32, i32, i32) {
    %c0_i32 = arith.constant 0 : i32
    %c0_i32_0 = arith.constant 0 : i32
    return %arg0, %c0_i32, %arg1 : i32, i32, i32
  }
  func.func @transform_1(%arg0: i32, %arg1: i32) -> (i32, i32) {
    %c0_i32 = arith.constant 0 : i32
    %c0_i32_0 = arith.constant 0 : i32
    %c0_i32_1 = arith.constant 0 : i32
    return %c0_i32, %c0_i32_0 : i32, i32
  }
  func.func @transform_2(%arg0: i32, %arg1: i32) -> (i32, i32) {
    %c0_i32 = arith.constant 0 : i32
    %c0_i32_0 = arith.constant 0 : i32
    %c0_i32_1 = arith.constant 0 : i32
    return %c0_i32, %c0_i32_0 : i32, i32
  }
  func.func @transform_3(%arg0: i32, %arg1: i32) -> (i32, i32) {
    %c0_i32 = arith.constant 0 : i32
    %c0_i32_0 = arith.constant 0 : i32
    %c0_i32_1 = arith.constant 0 : i32
    return %c0_i32, %c0_i32_0 : i32, i32
  }
  func.func @transform_4(%arg0: i32, %arg1: i32) -> (i32, i32, i32) {
    %c0_i32 = arith.constant 0 : i32
    %c0_i32_0 = arith.constant 0 : i32
    return %arg0, %c0_i32, %arg1 : i32, i32, i32
  }
}

</mosaic_0001>

<bundles_post_ra>
// kernel: tpu_custom_call.1
= control target key start
LH: loop header
LB: loop body
LE: loop exit
PB: predicated region body
PF: predicated region fallthrough
CT: control target
= control target key end

     0   :  { %9 = vsyncpa [#allocation3], 0  ;;  %s724_s0 = inlined_call_operand.vmem [shape: bf16[2,36,256], index: 0, kind: input, shape index: {}]   ;;  %s725_s1 = inlined_call_operand.vmem [shape: bf16[8,36], index: 1, kind: input, shape index: {}]   ;;  %s726_s2 = inlined_call_operand.vmem [shape: f32[8,1], index: 2, kind: input, shape index: {}]   ;;  %s727_s3 = inlined_call_operand.vmem [shape: f32[8,1], index: 3, kind: input, shape index: {}]   ;;  %s728_s4 = inlined_call_operand.hbm [shape: f32[2,8,256], index: 4, kind: output, shape index: {}]  }
   0x1   :  { %11 = vsyncpa [#allocation3 + $0x1], 0  ;;  %s616_s15 = smov 0   ;;  %s618_s16 = smov 0  }
   0x2   :  { %s620_s17 = smov 0   ;;  %s622_s18 = smov 0  }
   0x3   :  { %s624_s19 = smov 0   ;;  %s626_s20 = smov 0  }
   0x4 LB: > { %s424_s21 = sadd.s32 4294967295, %s587_s20   ;;  %s425_s22 = sadd.s32 4294967294, %s587_s20   ;;  %s587_s20 = sphi %s626_s20, %s17_s20   ;;  %s583_s19 = sphi %s624_s19, %s735_s19   ;;  %s579_s18 = sphi %s622_s18, %s734_s18   ;;  %s575_s17 = sphi %s620_s17, %s733_s17   ;;  %s571_s16 = sphi %s618_s16, %s732_s16   ;;  %s567_s15 = sphi %s616_s15, %s731_s15  }
   0x5   : > { %s29_s23 = sadd.s32 1, %s583_s19  ;;  %s129_s24 = sadd.s32 1, %s575_s17 }
   0x6   : > { %p31_p0 = scmp.ge.s32.totalorder %s29_s23, 2  ;;  %p139_p1 = scmp.ne.s32.totalorder %s575_s17, %s571_s16 }
   0x7   : > { %p140_p2 = scmp.eq.s32.totalorder %s424_s21, 1  ;;  %p145_p3 = scmp.ne.s32.totalorder %s571_s16, %s567_s15 }
   0x8   : > { %s737_s23 = smov (%p31_p0, %s29_s23), 0  ;;  %p146_p5 = scmp.eq.s32.totalorder %s425_s22, 1 }
   0x9   : > { %p656_p4 = por %p140_p2, %p139_p1  ;;  %s124_s26 = ssub.s32 %s583_s19, %s737_s23 }
   0xa   : > { %p428_p6 = scmp.ge.s32.totalorder %s587_s20, 1  ;;  %p127_p7 = scmp.eq.s32.totalorder %s124_s26, 0 }
   0xb   : > { %p663_p8 = por %p146_p5, %p145_p3  ;;  %p186_p9 = scmp.lt.s32.totalorder %s587_s20, 3 }
   0xc   : > { %s669_s28 = scalar_select %p127_p7, %s575_s17, %s129_s24  }
   0xd   : > { %p187_p10 = pnand %p428_p6, %p186_p9 }
   0xe   : > { %p217_p11 = scmp.lt.s32.totalorder (!%p187_p10), %s579_s18, 1  ;;  %s213_s14 = sand.u32 (!%p187_p10), 1, %s571_s16  }
   0xf   : > { %190 = sbr.rel (%p187_p10) target bundleno = 254 (0xfe), region = 36  ;;  %s429_s21 = sshll.u32 (!%p187_p10), %s213_s14, 4 }
  0x10   : > { %s444_s22 = sshll.u32 (!%p187_p10), %s579_s18, 8  ;;  %s215_s24 = scalar_lea.vmem (!%p187_p10), [#allocation2], %s429_s21 }
  0x11   : > { %s348_s26 = sshll.u32 (!%p187_p10), %s215_s24, 4  ;;  %s332_s6 = scalar_lea.sflag (!%p187_p10), [#allocation3], %s213_s14  ;;  %s349_s26 = int_to_ptr.vmem [resolvable:$true] %s348_s26 }
  0x12   : > { %s511_s7 = scalar_lea.vmem (!%p187_p10), %s349_s26, 256 }
  0x13   : > { %p512_p12 = scmp.ne.s32.totalorder (!%p187_p10), %s349_s26, %s511_s7 }
  0x14   : > { %v589_v0 = vmov 0   ;;  %v311_v1 = vld [vmem:[%s726_s2] sm:$0xff]  ;;  %s218_s5 = scalar_select %p217_p11, %s579_s18, 1  ;;  %vm263_vm0 = vcmask 1041408   ;;  %vm259_vm1 = vcmask 293888  }
  0x15   : > { %302 = vmatprep.mubr.bf16.mxu0 %v589_v0  ;;  %502 = vset.pattern.permute.xlu0 %v589_v0  ;;  %v319_v2 = vld [vmem:[%s727_s3] sm:$0xff]  ;;  %p513_p13 = pnand %p512_p12, %p656_p4  ;;  %s590_s18 = smov [#allocation2]  }
  0x16   : > { %314 = vperm.xlu0 %502, %v311_v1   ;;  %s445_s8 = smul.u32 40, %s218_s5  ;;  %v228_v11 = vld [vmem:[%s725_s1] sm:$0xf]  ;;  %s346_s5 = scalar_lea.hbm %s728_s4, %s444_s22 }
  0x17   : > { %p514_p0 = pneg %p513_p13 }
  0x18   : > { %s224_s11 = scalar_lea.vmem %s724_s0, %s445_s8  ;;  %s515_s8 = sshll.u32 %s590_s18, 4  ;;  %s516_s8 = int_to_ptr.vmem [resolvable:$false] %s515_s8 }
  0x19   : > { %v233_v3 = vld [vmem:[%s224_s11 + $0x20] sm:$0x33]  ;;  %v505_v6 = vld [vmem:[%s224_s11 + $0x14] ss:$8 sps:$4 sm:$0xff]   ;;  %v507_v8 = vld [vmem:[%s224_s11 + $0x10] ss:$8 sps:$4 sm:$0xff]   ;;  %p518_p1 = scmp.lt.s32.totalorder %s349_s26, %s516_s8 }
  0x1a   : > { %322 = vperm.xlu0 %502, %v319_v2   ;;  %v436_v4 = vcombine.high %v233_v3, %v233_v3  ;;  %v435_v5 = vcombine.low %v233_v3, %v233_v3  ;;  %v508_v9 = vld [vmem:[%s224_s11 + $0x4] ss:$8 sps:$4 sm:$0xff]   ;;  %v510_v10 = vld [vmem:[%s224_s11] ss:$8 sps:$4 sm:$0xff]   ;;  %s517_s9 = scalar_lea.vmem %s516_s8, 512 }
  0x1b   : > { %p519_p2 = scmp.lt.s32.totalorder %s517_s9, %s511_s7 }
  0x1c   : > { %437 = vmatprep.subr.msk.bf16.mxu0 %vm263_vm0, %v436_v4  ;;  %v265_v7 = vsel %vm263_vm0, %v435_v5, 0 }
  0x1d   : > { %281 = vmatpush1.bf16.msra.mxu0 %v265_v7  ;;  %p520_p3 = por %p519_p2, %p518_p1 }
  0x1e   : > { %282 = vmatprep.subr.bf16.mxu0 %v505_v6 }
  0x1f   : > { %p521_p5 = pnand %p520_p3, %p514_p0 }
  0x21   : > { %283 = vmatpush1.bf16.msra.mxu0 %v507_v8 }
  0x22   : > { %284 = vmatprep.subr.bf16.mxu0 %v508_v9 }
  0x25   : > { %285 = vmatpush1.bf16.msra.mxu0 %v510_v10 }
  0x28   : > { %438 = vmatmul.mubr.msk.bf16.vlgmr.msra.gmra.mxu0 %vm259_vm1, %v228_v11 }
  0x91   : > { %v315_v12 = vpop.permute.xlu0 %314 }
  0x95   : > { %v323_v15 = vpop.permute.xlu0 %322 }
  0xe8   : > { %v304_v13 = vpop.f32.mrf.mxu0 }
  0xe9   : > { %v317_v14 = vmul.f32 %v315_v12, %v304_v13 }
  0xea   : > { %v306_v16 = vpop.f32.mrf.mxu0 }
  0xeb   : > { %v325_v17 = vadd.f32 %v323_v15, %v317_v14  ;;  %v318_v18 = vmul.f32 %v315_v12, %v306_v16 }
  0xec   : > { %v308_v19 = vpop.f32.mrf.mxu0 }
  0xed   : > { %v327_v20 = vmax.f32 %v325_v17, 0.0  ;;  %v326_v21 = vadd.f32 %v323_v15, %v318_v18 }
  0xee   : > { %v309_v22 = vpop.f32.mrf.mxu0 }
  0xef   : > { %329 = vst [vmem:[%s215_s24] sm:$0xff] %v327_v20  ;;  %v328_v23 = vmax.f32 %v326_v21, 0.0 }
  0xf1   : > { %330 = vst [vmem:[%s215_s24 + $0x8] sm:$0xff] %v328_v23 }
  0xf2   : > { %524 = shalt.err (!%p521_p5)
}
  0xf3   : > { %s525_s10 = scalar_lea.hbm %s346_s5, 256  ;;  %s529_s13 = scalar_lea.hbm %s728_s4, 512 }
  0xf4   : > { %p526_p6 = scmp.ne.s32.totalorder %s346_s5, %s525_s10  ;;  %p530_p10 = scmp.lt.s32.totalorder %s346_s5, %s728_s4 }
  0xf5   : > { %p531_p11 = scmp.lt.s32.totalorder %s529_s13, %s525_s10 }
  0xf6   : > { %p527_p7 = pnand %p526_p6, %p656_p4 }
  0xf7   : > { %p532_p12 = por %p531_p11, %p530_p10 }
  0xf8   : > { %p528_p9 = pneg %p527_p7 }
  0xfa   : > { %p533_p13 = pnand %p532_p12, %p528_p9 }
  0xfc   : > { %536 = shalt.err (!%p533_p13)
}
  0xfd   : > { %446 = dma.vmem_to_hbm [thread:$0]  (%p656_p4), %s349_s26, 256, %s346_s5, %s332_s6  }
  0xfe PF: > { %p452_p0 = scmp.ge.s32.totalorder %s587_s20, 2  ;;  %s360_s22 = sand.u32 1, %s567_s15  }
  0xff   : > { %s361_s24 = scalar_lea.sflag [#allocation3], %s360_s22 }
 0x100   : > { %p449_p1 = pnand %p452_p0, %p663_p8 }
 0x102   : > { %p450_p2 = pneg %p449_p1 }
 0x104   : > { %562 = dma.done.wait (%p450_p2), %s361_s24, 256  }
 0x105   : > { %564 = vsyncadd (%p450_p2), %s361_s24, 4294967040  ;;  %s17_s20 = sadd.s32 1, %s587_s20   ;;  %s731_s15 = smov %s571_s16 }
 0x106   : > { %p14_p3 = scmp.ge.s32.totalorder %s17_s20, 4   ;;  %s732_s16 = smov %s575_s17 }
 0x107   : > { %s733_s17 = smov %s669_s28  ;;  %s734_s18 = smov %s583_s19 }
 0x108   : > { %s735_s19 = smov %s737_s23  ;;  %16 = sbr.rel (!%p14_p3) target bundleno = 4 (0x4), region = 71 }
 0x10d   :  { %366 = vsyncpa [#allocation3], 1 }
 0x10e   :  { %368 = vsyncpa [#allocation3 + $0x1], 1 }

</bundles_post_ra>
